<compile_context>
chip_gen: v6e
topology: v6e:2x2x1
jax: 0.10.0
libtpu: 0.0.40
codegen_flags: <defaults>
</compile_context>

<pallas_src>
import functools

import jax
import jax.numpy as jnp
from jax import lax
from jax.experimental import pallas as pl
from jax.experimental.pallas import tpu as pltpu

_LANES = 128       # lane width of a vreg (last-dim tiling unit)
_MAX_BLOCK_B = 256  # batch rows per grid step when batching large rollouts


def _round_up(n, m):
    return ((n + m - 1) // m) * m


# ---------------------------------------------------------------------------
# Pallas kernels
# ---------------------------------------------------------------------------
def _dqn_kernel(x_ref, w1_ref, b1_ref, w2_ref, b2_ref, w3_ref, b3_ref,
                q_ref, act_ref, *, num_actions):
    """Fused 3-layer MLP + greedy-argmax epilogue.

    Q = relu(relu(x@W1+b1)@W2+b2)@W3 + b3, stored lane-dense (out_pad=128).
    The greedy action (smallest column index attaining the row max over the
    `num_actions` valid lanes) is computed on the XLU/VPU and stored as a
    lane-dense int32 block (broadcast across lanes; column 0 is read back).
    Weights are bf16; MXU accumulation and the bias/ReLU epilogues are f32.
    """
    x = x_ref[...]
    h1 = jnp.maximum(
        jnp.dot(x, w1_ref[...], preferred_element_type=jnp.float32) + b1_ref[...],
        0.0,
    ).astype(jnp.bfloat16)
    h2 = jnp.maximum(
        jnp.dot(h1, w2_ref[...], preferred_element_type=jnp.float32) + b2_ref[...],
        0.0,
    ).astype(jnp.bfloat16)
    q = jnp.dot(h2, w3_ref[...], preferred_element_type=jnp.float32) + b3_ref[...]
    q_ref[...] = q

    # Fused argmax over the first `num_actions` lanes only.
    col = lax.broadcasted_iota(jnp.int32, q.shape, 1)
    valid = col < num_actions
    qm = jnp.where(valid, q, jnp.float32(-1e30))
    qmax = jnp.max(qm, axis=-1, keepdims=True)                      # XLU
    idx = jnp.where((qm == qmax) & valid, col, jnp.int32(q.shape[-1]))
    action = jnp.min(idx, axis=-1, keepdims=True)                   # XLU
    act_ref[...] = jnp.broadcast_to(action, act_ref.shape)          # dense vst


def _actor_critic_kernel(
    x_ref, w1_ref, b1_ref, w2_ref, b2_ref, wh_ref, bh_ref, out_ref, *, num_actions
):
    """Shared trunk + fused (actor|critic) head + in-kernel masked log_softmax.

    wh/bh hold the actor weights in columns [0, A) and the critic weights in
    column A of a single 128-lane-padded matrix, so both heads are one dense
    MXU push and one dense store.

    Output columns: [0, A)  -> actor log-probabilities
                    [A]     -> critic value (raw)
                    rest    -> raw accumulator values.  INVARIANT: these are
                               zero only because the pad columns of wh/bh are
                               zero-initialized; do not rely on them if the
                               head weights ever become non-zero-padded.
    """
    x = x_ref[...]
    h1 = jnp.maximum(
        jnp.dot(x, w1_ref[...], preferred_element_type=jnp.float32) + b1_ref[...],
        0.0,
    ).astype(jnp.bfloat16)
    h2 = jnp.maximum(
        jnp.dot(h1, w2_ref[...], preferred_element_type=jnp.float32) + b2_ref[...],
        0.0,
    ).astype(jnp.bfloat16)
    raw = jnp.dot(h2, wh_ref[...], preferred_element_type=jnp.float32) + bh_ref[...]

    # Masked log_softmax over the first `num_actions` lanes only (padded lanes
    # and the critic column must not influence max / logsumexp).
    col = lax.broadcasted_iota(jnp.int32, raw.shape, 1)
    is_logit = col < num_actions
    neg_big = jnp.float32(-1e30)
    masked = jnp.where(is_logit, raw, neg_big)
    m = jnp.max(masked, axis=-1, keepdims=True)              # XLU
    e = jnp.where(is_logit, jnp.exp(masked - m), 0.0)        # EUP
    lse = m + jnp.log(jnp.sum(e, axis=-1, keepdims=True))    # XLU + EUP
    out_ref[...] = jnp.where(is_logit, raw - lse, raw)


# ---------------------------------------------------------------------------
# pallas_call wrappers
# ---------------------------------------------------------------------------
def _weight_spec():
    # Whole array resident in VMEM for the entire grid (DMA'd once per call,
    # amortized over all batch tiles).  No block_shape / index_map needed.
    return pl.BlockSpec(memory_space=pltpu.MemorySpace.VMEM)


@functools.partial(jax.jit, static_argnames=("num_actions", "block_b"))
def dqn_forward(x2d, params, *, num_actions, block_b):
    w1, b1, w2, b2, w3, b3 = params
    b_total, d_pad = x2d.shape
    out_pad = w3.shape[1]
    grid = (b_total // block_b,)
    kernel = functools.partial(_dqn_kernel, num_actions=num_actions)
    row_spec = pl.BlockSpec((block_b, d_pad), lambda i: (i, 0))
    out_spec = pl.BlockSpec((block_b, out_pad), lambda i: (i, 0))
    return pl.pallas_call(
        kernel,
        grid=grid,
        in_specs=[row_spec] + [_weight_spec()] * 6,
        out_specs=(out_spec, out_spec),
        out_shape=(
            jax.ShapeDtypeStruct((b_total, out_pad), jnp.float32),   # Q values
            jax.ShapeDtypeStruct((b_total, out_pad), jnp.int32),     # greedy action
        ),
        compiler_params=pltpu.CompilerParams(dimension_semantics=("parallel",)),
    )(x2d, w1, b1, w2, b2, w3, b3)


@functools.partial(jax.jit, static_argnames=("num_actions", "block_b"))
def actor_critic_forward(x2d, params, *, num_actions, block_b):
    w1, b1, w2, b2, wh, bh = params
    b_total, d_pad = x2d.shape
    out_pad = wh.shape[1]
    grid = (b_total // block_b,)
    kernel = functools.partial(_actor_critic_kernel, num_actions=num_actions)
    return pl.pallas_call(
        kernel,
        grid=grid,
        in_specs=[pl.BlockSpec((block_b, d_pad), lambda i: (i, 0))]
        + [_weight_spec()] * 6,
        out_specs=pl.BlockSpec((block_b, out_pad), lambda i: (i, 0)),
        out_shape=jax.ShapeDtypeStruct((b_total, out_pad), jnp.float32),
        compiler_params=pltpu.CompilerParams(dimension_semantics=("parallel",)),
    )(x2d, w1, b1, w2, b2, wh, bh)


# ---------------------------------------------------------------------------
# Parameter init (deterministic, synthetic).  Weights bf16, biases f32,
# everything zero-padded to lane-friendly shapes (padding MUST stay zero —
# the kernels rely on it to keep padded lanes inert).
# ---------------------------------------------------------------------------
def _linear_params_raw(key, fan_in, fan_out):
    kw, kb = jax.random.split(key)
    scale = 1.0 / jnp.sqrt(jnp.float32(fan_in))
    w = jax.random.normal(kw, (fan_in, fan_out), jnp.float32) * scale
    b = jax.random.normal(kb, (1, fan_out), jnp.float32) * 0.01
    return w, b


def _linear_params(key, fan_in, fan_out, *, pad_in=None, pad_out=None):
    pad_in = fan_in if pad_in is None else pad_in
    pad_out = fan_out if pad_out is None else pad_out
    w, b = _linear_params_raw(key, fan_in, fan_out)
    w_p = jnp.zeros((pad_in, pad_out), jnp.float32).at[:fan_in, :fan_out].set(w)
    b_p = jnp.zeros((1, pad_out), jnp.float32).at[:, :fan_out].set(b)
    return w_p.astype(jnp.bfloat16), b_p  # bf16 weights, f32 bias


class Policy:
    """JAX/Pallas mirror of the PyTorch `Policy` wrapper."""

    def __init__(self, policy_name, obs_shape, action_space, hidden=128, seed=42):
        self.policy_name = policy_name
        self.obs_shape = tuple(obs_shape)          # per-sample (C, H, W)
        self.num_actions = int(action_space)
        self.hidden = int(hidden)

        d_in = 1
        for d in self.obs_shape:
            d_in *= d
        self.d_in = d_in
        self.d_in_pad = max(_LANES, _round_up(d_in, _LANES))
        self.hidden_pad = max(_LANES, _round_up(self.hidden, _LANES))

        key = jax.random.PRNGKey(seed)

        if policy_name == "dqn":
            out_pad = max(_LANES, _round_up(self.num_actions, _LANES))
            self.out_pad = out_pad
            k1, k2, k3 = jax.random.split(key, 3)
            w1, b1 = _linear_params(k1, d_in, self.hidden,
                                    pad_in=self.d_in_pad, pad_out=self.hidden_pad)
            w2, b2 = _linear_params(k2, self.hidden, self.hidden,
                                    pad_in=self.hidden_pad, pad_out=self.hidden_pad)
            w3, b3 = _linear_params(k3, self.hidden, self.num_actions,
                                    pad_in=self.hidden_pad, pad_out=out_pad)
            self.params = (w1, b1, w2, b2, w3, b3)

        elif policy_name == "actor_critic":
            # heads fused into one padded matrix: cols [0,A) actor, col A critic
            out_pad = max(_LANES, _round_up(self.num_actions + 1, _LANES))
            self.out_pad = out_pad
            k1, k2, k3, k4 = jax.random.split(key, 4)
            w1, b1 = _linear_params(k1, d_in, self.hidden,
                                    pad_in=self.d_in_pad, pad_out=self.hidden_pad)
            w2, b2 = _linear_params(k2, self.hidden, self.hidden,
                                    pad_in=self.hidden_pad, pad_out=self.hidden_pad)
            wa, ba = _linear_params_raw(k3, self.hidden, self.num_actions)
            wv, bv = _linear_params_raw(k4, self.hidden, 1)
            wh = jnp.zeros((self.hidden_pad, out_pad), jnp.float32)
            wh = wh.at[: self.hidden, : self.num_actions].set(wa)
            wh = wh.at[: self.hidden, self.num_actions].set(wv[:, 0])
            bh = jnp.zeros((1, out_pad), jnp.float32)
            bh = bh.at[:, : self.num_actions].set(ba)
            bh = bh.at[:, self.num_actions].set(bv[0, 0])
            self.params = (w1, b1, w2, b2, wh.astype(jnp.bfloat16), bh)
        else:
            raise ValueError()

    # -- helpers ------------------------------------------------------------
    def _prep_input(self, x):
        """NCHW -> (B_total, d_in_pad) bf16 without a materialized zero buffer.

        Row-major flatten like torch .view(B, -1).  Feature/batch padding is
        only added when actually required (d_in not lane-aligned, or large
        batches that are tiled along the grid).  Padded rows are zero; their
        outputs are sliced away by the callers.
        """
        B = x.shape[0]
        x2d = jnp.asarray(x).reshape(B, -1).astype(jnp.bfloat16)
        pad_feat = self.d_in_pad - self.d_in
        if B > _MAX_BLOCK_B:
            block_b = _MAX_BLOCK_B
            pad_rows = _round_up(B, block_b) - B
        else:
            block_b = B   # single grid step; full-array block bypasses (8,128) gate
            pad_rows = 0
        if pad_feat or pad_rows:
            x2d = jnp.pad(x2d, ((0, pad_rows), (0, pad_feat)))
        return x2d, B, block_b

    def _ac_outputs(self, x):
        x2d, B, block_b = self._prep_input(x)
        out = actor_critic_forward(
            x2d, self.params, num_actions=self.num_actions, block_b=block_b)
        log_probs = out[:B, : self.num_actions]           # in-kernel log_softmax
        value = out[:B, self.num_actions : self.num_actions + 1]
        return log_probs, value

    def _dqn_outputs(self, x):
        x2d, B, block_b = self._prep_input(x)
        q_pad, act_pad = dqn_forward(
            x2d, self.params, num_actions=self.num_actions, block_b=block_b)
        return q_pad[:B, : self.num_actions], act_pad[:B, 0]

    # -- public API (mirrors the PyTorch module) ----------------------------
    def forward(self, *args):
        raise NotImplementedError

    def act(self, x, epsilon=0, key=None):
        if self.policy_name == "actor_critic":
            log_probs, value = self._ac_outputs(x)
            # TODO(synk): greedy argmax; Categorical sampling would need an
            # explicit RNG key in the API.
            action = jnp.argmax(log_probs, axis=-1)
            log_prob = jnp.take_along_axis(log_probs, action[:, None], axis=-1)
            return value, action, log_prob
        elif self.policy_name == "dqn":
            _, greedy = self._dqn_outputs(x)     # argmax fused in-kernel
            if epsilon > 0:
                # Explicit key keeps exploration reproducible / jittable at the
                # call site; deterministic fallback if none is given.
                if key is None:
                    key = jax.random.PRNGKey(0)
                k1, k2 = jax.random.split(key)
                rand_a = jax.random.randint(k1, greedy.shape, 0, self.num_actions)
                explore = jax.random.uniform(k2, greedy.shape) < epsilon
                return jnp.where(explore, rand_a, greedy)
            return greedy

    def eval_action(self, x, action):
        assert self.policy_name == "actor_critic"
        log_probs, value = self._ac_outputs(x)
        probs = jnp.exp(log_probs)
        log_prob = jnp.take_along_axis(
            log_probs, action.astype(jnp.int32)[:, None], axis=-1
        )
        entropy = -jnp.sum(probs * log_probs, axis=-1, keepdims=True)
        return value, log_prob, entropy

    def get_value(self, x):
        if self.policy_name == "actor_critic":
            _, value = self._ac_outputs(x)
            return value
        elif self.policy_name == "dqn":
            q, _ = self._dqn_outputs(x)
            return q


# ---------------------------------------------------------------------------
# Demo / smoke test
# ---------------------------------------------------------------------------
if __name__ == "__main__":
    B = 2
    obs_shape = (4, 16, 16)        # per-sample (C, H, W)
    num_actions = 8

    key = jax.random.PRNGKey(0)
    x = jax.random.normal(key, (B,) + obs_shape, jnp.float32)

    # ---- DQN branch --------------------------------------------------------
    dqn_policy = Policy("dqn", obs_shape, num_actions)
    q_values = dqn_policy.get_value(x)
    actions_dqn = dqn_policy.act(x, epsilon=0)
    actions_eps = dqn_policy.act(x, epsilon=0.5, key=jax.random.PRNGKey(123))
    jax.block_until_ready((q_values, actions_dqn, actions_eps))
    assert q_values.shape == (B, num_actions)
    assert actions_dqn.shape == (B,)
    assert actions_eps.shape == (B,)
    assert bool(jnp.all(jnp.isfinite(q_values)))
    # fused in-kernel argmax must match host-side argmax over the Q output
    assert bool(jnp.all(actions_dqn == jnp.argmax(q_values, axis=-1)))

    # large-batch path: batch grid axis ("parallel"), weights DMA'd once
    B_big = 300
    x_big = jax.random.normal(jax.random.PRNGKey(1), (B_big,) + obs_shape, jnp.float32)
    x_big = x_big.at[:B].set(x)
    q_big = dqn_policy.get_value(x_big)
    a_big = dqn_policy.act(x_big)
    jax.block_until_ready((q_big, a_big))
    assert q_big.shape == (B_big, num_actions)
    assert a_big.shape == (B_big,)
    assert bool(jnp.all(jnp.isfinite(q_big)))
    assert bool(jnp.allclose(q_big[:B], q_values, rtol=2e-2, atol=2e-2))

    # ---- ActorCritic branch ------------------------------------------------
    ac_policy = Policy("actor_critic", obs_shape, num_actions)
    value, action, log_prob = ac_policy.act(x)
    v2, lp2, ent = ac_policy.eval_action(x, action)
    jax.block_until_ready((value, action, log_prob, v2, lp2, ent))
    assert value.shape == (B, 1)
    assert action.shape == (B,)
    assert log_prob.shape == (B, 1)
    assert lp2.shape == (B, 1)
    assert ent.shape == (B, 1)
    # log-probs must be <= 0 and entropy within [0, log(A)]
    assert bool(jnp.all(log_prob <= 1e-5))
    assert bool(jnp.all(ent >= -1e-5)) and bool(
        jnp.all(ent <= jnp.log(jnp.float32(num_actions)) + 1e-4)
    )

    print("KERNEL_OK")
</pallas_src>

<mosaic_0001>
module attributes {stable_mosaic.version = 11 : i64} {
  func.func @_dqn_kernel(%arg0: i32, %arg1: memref<2x1024xbf16, #tpu.memory_space<vmem>>, %arg2: memref<1024x128xbf16, #tpu.memory_space<vmem>>, %arg3: memref<1x128xf32, #tpu.memory_space<vmem>>, %arg4: memref<128x128xbf16, #tpu.memory_space<vmem>>, %arg5: memref<1x128xf32, #tpu.memory_space<vmem>>, %arg6: memref<128x128xbf16, #tpu.memory_space<vmem>>, %arg7: memref<1x128xf32, #tpu.memory_space<vmem>>, %arg8: memref<2x128xf32, #tpu.memory_space<vmem>>, %arg9: memref<2x128xi32, #tpu.memory_space<vmem>>) attributes {dimension_semantics = [#tpu.dimension_semantics<parallel>], iteration_bounds = array<i64: 1>, scalar_prefetch = 0 : i64, scratch_operands = 0 : i64, tpu.core_type = #tpu.core_type<tc>, window_params = [{transform_indices = @transform_0, window_bounds = array<i64: 2, 1024>}, {pipeline_mode = #tpu.pipeline_mode<synchronous>, transform_indices = @transform_1, window_bounds = array<i64: 1024, 128>}, {pipeline_mode = #tpu.pipeline_mode<synchronous>, transform_indices = @transform_2, window_bounds = array<i64: 1, 128>}, {pipeline_mode = #tpu.pipeline_mode<synchronous>, transform_indices = @transform_3, window_bounds = array<i64: 128, 128>}, {pipeline_mode = #tpu.pipeline_mode<synchronous>, transform_indices = @transform_4, window_bounds = array<i64: 1, 128>}, {pipeline_mode = #tpu.pipeline_mode<synchronous>, transform_indices = @transform_5, window_bounds = array<i64: 128, 128>}, {pipeline_mode = #tpu.pipeline_mode<synchronous>, transform_indices = @transform_6, window_bounds = array<i64: 1, 128>}, {transform_indices = @transform_7, window_bounds = array<i64: 2, 128>}, {transform_indices = @transform_8, window_bounds = array<i64: 2, 128>}]} {
    %c0 = arith.constant 0 : index
    %c0_0 = arith.constant 0 : index
    %0 = vector.load %arg1[%c0, %c0_0] : memref<2x1024xbf16, #tpu.memory_space<vmem>>, vector<2x1024xbf16>
    %c0_1 = arith.constant 0 : index
    %c0_2 = arith.constant 0 : index
    %1 = vector.load %arg2[%c0_1, %c0_2] : memref<1024x128xbf16, #tpu.memory_space<vmem>>, vector<1024x128xbf16>
    %cst = arith.constant dense<0.000000e+00> : vector<2x128xf32>
    %2 = tpu.matmul %0, %1, %cst {dimension_numbers = #tpu.dot_dimension_numbers<[1], [0], [0], [1], [0, 0, 1, 1], [], []>} : vector<2x1024xbf16>, vector<1024x128xbf16>, vector<2x128xf32> -> vector<2x128xf32>
    %c0_3 = arith.constant 0 : index
    %c0_4 = arith.constant 0 : index
    %3 = vector.load %arg3[%c0_3, %c0_4] : memref<1x128xf32, #tpu.memory_space<vmem>>, vector<1x128xf32>
    %4 = vector.broadcast %3 : vector<1x128xf32> to vector<2x128xf32>
    %5 = arith.addf %2, %4 : vector<2x128xf32>
    %cst_5 = arith.constant 0.000000e+00 : f32
    %6 = vector.broadcast %cst_5 : f32 to vector<2x128xf32>
    %7 = arith.maximumf %5, %6 : vector<2x128xf32>
    %8 = arith.truncf %7 : vector<2x128xf32> to vector<2x128xbf16>
    %c0_6 = arith.constant 0 : index
    %c0_7 = arith.constant 0 : index
    %9 = vector.load %arg4[%c0_6, %c0_7] : memref<128x128xbf16, #tpu.memory_space<vmem>>, vector<128x128xbf16>
    %cst_8 = arith.constant dense<0.000000e+00> : vector<2x128xf32>
    %10 = tpu.matmul %8, %9, %cst_8 {dimension_numbers = #tpu.dot_dimension_numbers<[1], [0], [0], [1], [0, 0, 1, 1], [], []>} : vector<2x128xbf16>, vector<128x128xbf16>, vector<2x128xf32> -> vector<2x128xf32>
    %c0_9 = arith.constant 0 : index
    %c0_10 = arith.constant 0 : index
    %11 = vector.load %arg5[%c0_9, %c0_10] : memref<1x128xf32, #tpu.memory_space<vmem>>, vector<1x128xf32>
    %12 = vector.broadcast %11 : vector<1x128xf32> to vector<2x128xf32>
    %13 = arith.addf %10, %12 : vector<2x128xf32>
    %cst_11 = arith.constant 0.000000e+00 : f32
    %14 = vector.broadcast %cst_11 : f32 to vector<2x128xf32>
    %15 = arith.maximumf %13, %14 : vector<2x128xf32>
    %16 = arith.truncf %15 : vector<2x128xf32> to vector<2x128xbf16>
    %c0_12 = arith.constant 0 : index
    %c0_13 = arith.constant 0 : index
    %17 = vector.load %arg6[%c0_12, %c0_13] : memref<128x128xbf16, #tpu.memory_space<vmem>>, vector<128x128xbf16>
    %cst_14 = arith.constant dense<0.000000e+00> : vector<2x128xf32>
    %18 = tpu.matmul %16, %17, %cst_14 {dimension_numbers = #tpu.dot_dimension_numbers<[1], [0], [0], [1], [0, 0, 1, 1], [], []>} : vector<2x128xbf16>, vector<128x128xbf16>, vector<2x128xf32> -> vector<2x128xf32>
    %c0_15 = arith.constant 0 : index
    %c0_16 = arith.constant 0 : index
    %19 = vector.load %arg7[%c0_15, %c0_16] : memref<1x128xf32, #tpu.memory_space<vmem>>, vector<1x128xf32>
    %20 = vector.broadcast %19 : vector<1x128xf32> to vector<2x128xf32>
    %21 = arith.addf %18, %20 : vector<2x128xf32>
    %c0_17 = arith.constant 0 : index
    %c0_18 = arith.constant 0 : index
    %22 = vector.load %arg8[%c0_17, %c0_18] : memref<2x128xf32, #tpu.memory_space<vmem>>, vector<2x128xf32>
    tpu.vector_store %arg8[%c0_17, %c0_18], %21 {strides = array<i32>} : memref<2x128xf32, #tpu.memory_space<vmem>>, vector<2x128xf32>,
    %23 = tpu.iota {dimensions = array<i32: 1>} : vector<2x128xi32>
    %c8_i32 = arith.constant 8 : i32
    %24 = vector.broadcast %c8_i32 : i32 to vector<2x128xi32>
    %25 = arith.cmpi slt, %23, %24 : vector<2x128xi32>
    %cst_19 = arith.constant -1.000000e+30 : f32
    %26 = vector.broadcast %cst_19 : f32 to vector<2x128xf32>
    %27 = arith.select %25, %21, %26 : vector<2x128xi1>, vector<2x128xf32>
    %cst_20 = arith.constant dense<0xFF800000> : vector<2xf32>
    %28 = vector.multi_reduction <maximumf>, %27, %cst_20 [1] : vector<2x128xf32> to vector<2xf32>
    %29 = vector.shape_cast %28 : vector<2xf32> to vector<2x1xf32>
    %30 = vector.broadcast %29 : vector<2x1xf32> to vector<2x128xf32>
    %31 = arith.cmpf oeq, %27, %30 : vector<2x128xf32>
    %32 = arith.andi %31, %25 : vector<2x128xi1>
    %c128_i32 = arith.constant 128 : i32
    %33 = vector.broadcast %c128_i32 : i32 to vector<2x128xi32>
    %34 = arith.select %32, %23, %33 : vector<2x128xi1>, vector<2x128xi32>
    %cst_21 = arith.constant dense<2147483647> : vector<2xi32>
    %35 = vector.multi_reduction <minsi>, %34, %cst_21 [1] : vector<2x128xi32> to vector<2xi32>
    %36 = vector.shape_cast %35 : vector<2xi32> to vector<2x1xi32>
    %37 = vector.shape_cast %36 : vector<2x1xi32> to vector<2x1xi32>
    %38 = vector.broadcast %37 : vector<2x1xi32> to vector<2x128xi32>
    %c0_22 = arith.constant 0 : index
    %c0_23 = arith.constant 0 : index
    %39 = vector.load %arg9[%c0_22, %c0_23] : memref<2x128xi32, #tpu.memory_space<vmem>>, vector<2x128xi32>
    tpu.vector_store %arg9[%c0_22, %c0_23], %38 {strides = array<i32>} : memref<2x128xi32, #tpu.memory_space<vmem>>, vector<2x128xi32>,
    return
  }
  func.func @transform_0(%arg0: i32) -> (i32, i32) {
    %c0_i32 = arith.constant 0 : i32
    %c0_i32_0 = arith.constant 0 : i32
    return %arg0, %c0_i32 : i32, i32
  }
  func.func @transform_1(%arg0: i32) -> (i32, i32) {
    %c0_i32 = arith.constant 0 : i32
    %c0_i32_0 = arith.constant 0 : i32
    %c0_i32_1 = arith.constant 0 : i32
    return %c0_i32, %c0_i32_0 : i32, i32
  }
  func.func @transform_2(%arg0: i32) -> (i32, i32) {
    %c0_i32 = arith.constant 0 : i32
    %c0_i32_0 = arith.constant 0 : i32
    %c0_i32_1 = arith.constant 0 : i32
    return %c0_i32, %c0_i32_0 : i32, i32
  }
  func.func @transform_3(%arg0: i32) -> (i32, i32) {
    %c0_i32 = arith.constant 0 : i32
    %c0_i32_0 = arith.constant 0 : i32
    %c0_i32_1 = arith.constant 0 : i32
    return %c0_i32, %c0_i32_0 : i32, i32
  }
  func.func @transform_4(%arg0: i32) -> (i32, i32) {
    %c0_i32 = arith.constant 0 : i32
    %c0_i32_0 = arith.constant 0 : i32
    %c0_i32_1 = arith.constant 0 : i32
    return %c0_i32, %c0_i32_0 : i32, i32
  }
  func.func @transform_5(%arg0: i32) -> (i32, i32) {
    %c0_i32 = arith.constant 0 : i32
    %c0_i32_0 = arith.constant 0 : i32
    %c0_i32_1 = arith.constant 0 : i32
    return %c0_i32, %c0_i32_0 : i32, i32
  }
  func.func @transform_6(%arg0: i32) -> (i32, i32) {
    %c0_i32 = arith.constant 0 : i32
    %c0_i32_0 = arith.constant 0 : i32
    %c0_i32_1 = arith.constant 0 : i32
    return %c0_i32, %c0_i32_0 : i32, i32
  }
  func.func @transform_7(%arg0: i32) -> (i32, i32) {
    %c0_i32 = arith.constant 0 : i32
    %c0_i32_0 = arith.constant 0 : i32
    return %arg0, %c0_i32 : i32, i32
  }
  func.func @transform_8(%arg0: i32) -> (i32, i32) {
    %c0_i32 = arith.constant 0 : i32
    %c0_i32_0 = arith.constant 0 : i32
    return %arg0, %c0_i32 : i32, i32
  }
}

</mosaic_0001>

<bundles_post_ra>
// kernel: dqn_forward.1
= control target key start
LH: loop header
LB: loop body
LE: loop exit
PB: predicated region body
PF: predicated region fallthrough
CT: control target
= control target key end

     0   :  { %14 = vsyncpa [#allocation3], 0  ;;  %s1683_s0 = inlined_call_operand.hbm [shape: bf16[2,1024], index: 0, kind: input, shape index: {}]   ;;  %s1684_s1 = inlined_call_operand.hbm [shape: bf16[1024,128], index: 1, kind: input, shape index: {}]   ;;  %s1685_s2 = inlined_call_operand.vmem [shape: f32[1,128], index: 2, kind: input, shape index: {}]   ;;  %s1686_s3 = inlined_call_operand.hbm [shape: bf16[128,128], index: 3, kind: input, shape index: {}]   ;;  %s1687_s4 = inlined_call_operand.vmem [shape: f32[1,128], index: 4, kind: input, shape index: {}]   ;;  %s1688_s5 = inlined_call_operand.hbm [shape: bf16[128,128], index: 5, kind: input, shape index: {}]   ;;  %s1689_s6 = inlined_call_operand.vmem [shape: f32[1,128], index: 6, kind: input, shape index: {}]   ;;  %s1690_s7 = inlined_call_operand.hbm [shape: f32[2,128], index: 7, kind: output, shape index: {0}]   ;;  %s1691_s8 = inlined_call_operand.hbm [shape: s32[2,128], index: 8, kind: output, shape index: {1}]  }
   0x1   :  { %15 = vsyncpa [#allocation6], 0 }
   0x2   :  { %16 = vsyncpa [#allocation9], 0 }
   0x3   :  { %17 = vsyncpa [#allocation4], 0 }
   0x4   :  { %18 = vsyncpa [#allocation12], 0  ;;  %s1558_s27 = smov [#allocation5]  }
   0x5   :  { %s34_s28 = sshll.u32 %s1558_s27, 4  ;;  %s35_s28 = int_to_ptr.vmem [resolvable:$true] %s34_s28 }
   0x6   :  { %s1436_s29 = scalar_lea.vmem %s35_s28, 8192  ;;  %p1441_p1 = scmp.lt.s32.totalorder %s35_s28, %s35_s28 }
   0x7   :  { %p1437_p0 = scmp.ne.s32.totalorder %s35_s28, %s1436_s29  ;;  %p1442_p2 = scmp.lt.s32.totalorder %s1436_s29, %s1436_s29 }
   0x9   :  { %p1443_p3 = por %p1442_p2, %p1441_p1 }
   0xb   :  { %p1444_p4 = pnand %p1443_p3, %p1437_p0 }
   0xd   :  { %1447 = shalt.err (!%p1444_p4)
}
   0xe   :  { %s1559_s30 = smov 64   ;;  %s1560_s9 = smov 4  }
   0xf   :  { %40 = dma.hbm_to_vmem [thread:$0]  %s1684_s1, 8192, %s35_s28, [#allocation6], %s1559_s30, %s1559_s30, %s1560_s9  }
  0x10   :  { %s1561_s12 = smov [#allocation2]   ;;  %s1562_s14 = smov [#allocation7]  }
  0x11   :  { %s25_s13 = sshll.u32 %s1561_s12, 4  ;;  %s48_s15 = sshll.u32 %s1562_s14, 4  ;;  %s26_s13 = int_to_ptr.vmem [resolvable:$true] %s25_s13  ;;  %s49_s15 = int_to_ptr.vmem [resolvable:$true] %s48_s15 }
  0x12   :  { %s1456_s16 = scalar_lea.vmem %s26_s13, 128  ;;  %p1461_p6 = scmp.lt.s32.totalorder %s26_s13, %s26_s13 }
  0x13   :  { %p1457_p5 = scmp.ne.s32.totalorder %s26_s13, %s1456_s16  ;;  %p1462_p7 = scmp.lt.s32.totalorder %s1456_s16, %s1456_s16 }
  0x15   :  { %p1463_p8 = por %p1462_p7, %p1461_p6 }
  0x17   :  { %p1464_p9 = pnand %p1463_p8, %p1457_p5 }
  0x19   :  { %1467 = shalt.err (!%p1464_p9)
}
  0x1a   :  { %28 = dma.hbm_to_vmem [thread:$0]  %s1683_s0, 128, %s26_s13, [#allocation3]  }
  0x1b   :  { %s1476_s19 = scalar_lea.vmem %s49_s15, 1024  ;;  %p1481_p11 = scmp.lt.s32.totalorder %s49_s15, %s49_s15 }
  0x1c   :  { %p1477_p10 = scmp.ne.s32.totalorder %s49_s15, %s1476_s19  ;;  %p1482_p12 = scmp.lt.s32.totalorder %s1476_s19, %s1476_s19 }
  0x1e   :  { %p1483_p13 = por %p1482_p12, %p1481_p11 }
  0x20   :  { %p1484_p0 = pnand %p1483_p13, %p1477_p10 }
  0x22   :  { %1487 = shalt.err (!%p1484_p0)
}
  0x23   :  { %54 = dma.hbm_to_vmem [thread:$0]  %s1686_s3, 1024, %s49_s15, [#allocation6], %s1559_s30, %s1559_s30, %s1560_s9  }
  0x24   :  { %s1563_s21 = smov [#allocation8]  }
  0x25   :  { %s62_s22 = sshll.u32 %s1563_s21, 4  ;;  %s63_s22 = int_to_ptr.vmem [resolvable:$true] %s62_s22 }
  0x26   :  { %s1496_s23 = scalar_lea.vmem %s63_s22, 1024  ;;  %p1501_p2 = scmp.lt.s32.totalorder %s63_s22, %s63_s22 }
  0x27   :  { %p1497_p1 = scmp.ne.s32.totalorder %s63_s22, %s1496_s23  ;;  %p1502_p3 = scmp.lt.s32.totalorder %s1496_s23, %s1496_s23 }
  0x29   :  { %p1503_p4 = por %p1502_p3, %p1501_p2 }
  0x2b   :  { %p1504_p5 = pnand %p1503_p4, %p1497_p1 }
  0x2d   :  { %1507 = shalt.err (!%p1504_p5)
}
  0x2e   :  { %68 = dma.hbm_to_vmem [thread:$0]  %s1688_s5, 1024, %s63_s22, [#allocation9], %s1559_s30, %s1559_s30, %s1560_s9  }
  0x2f   :  { %1548 = dma.done.wait [#allocation3], 128  }
  0x30   :  { %1549 = vsyncadd [#allocation3], 4294967168 }
  0x31   :  { %1550 = dma.done.wait [#allocation6], 9216  }
  0x32   :  { %1551 = vsyncadd [#allocation6], 4294958080 }
  0x33   :  { %1552 = dma.done.wait [#allocation9], 1024  }
  0x34   :  { %1553 = vsyncadd [#allocation9], 4294966272  ;;  %v1347_v0 = vld [vmem:[#allocation5 + $0x78] sm:$0xff]   ;;  %v1351_v4 = vld [vmem:[#allocation5 + $0x70] sm:$0xff]   ;;  %v1564_v22 = vmov 1966171168   ;;  %v225_v24 = vlaneseq }
  0x35   :  { %v1348_v1 = vld [vmem:[#allocation5 + $0xf8] sm:$0xff]   ;;  %1190 = vmatprep.subr.bf16.mxu0 %v1347_v0  ;;  %v1352_v5 = vld [vmem:[#allocation5 + $0xf0] sm:$0xff]   ;;  %v1355_v8 = vld [vmem:[#allocation5 + $0x68] sm:$0xff]   ;;  %v223_v23 = vunpack.c.l.s4 %v1564_v22  ;;  %vm1566_vm0 = vmmov 0   ;;  %vm1053_vm2 = vcmask 1041408  }
  0x36   :  { %v1349_v2 = vld [vmem:[#allocation5 + $0x38] sm:$0xff]   ;;  %1212 = vmatprep.subr.bf16.mxu1 %v1348_v1  ;;  %v1353_v6 = vld [vmem:[#allocation5 + $0x30] sm:$0xff]   ;;  %v1356_v9 = vld [vmem:[#allocation5 + $0xe8] sm:$0xff]   ;;  %v226_v30 = vshrl.u32 %v225_v24, 7 }
  0x37   :  { %v1350_v3 = vld [vmem:[#allocation5 + $0xb8] sm:$0xff]   ;;  %1191 = vmatpush3.bf16.msra.mxu0 %v1349_v2  ;;  %v1354_v7 = vld [vmem:[#allocation5 + $0xb0] sm:$0xff]   ;;  %v1357_v10 = vld [vmem:[#allocation5 + $0x28] sm:$0xff]   ;;  %v224_v29 = vunpack.c.0.s8 %v223_v23 }
  0x38   :  { %1213 = vmatpush3.bf16.msra.mxu1 %v1350_v3  ;;  %1192 = vmatprep.subr.bf16.mxu0 %v1351_v4  ;;  %v1358_v11 = vld [vmem:[#allocation5 + $0xa8] sm:$0xff]   ;;  %v1359_v12 = vld [vmem:[#allocation5 + $0x60] sm:$0xff]   ;;  %v1363_v16 = vld [vmem:[#allocation5 + $0x58] sm:$0xff]  }
  0x39   :  { %1214 = vmatprep.subr.bf16.mxu1 %v1352_v5  ;;  %v1360_v13 = vld [vmem:[#allocation5 + $0xe0] sm:$0xff]   ;;  %v1364_v17 = vld [vmem:[#allocation5 + $0xd8] sm:$0xff]   ;;  %v1367_v20 = vld [vmem:[#allocation5 + $0x50] sm:$0xff]   ;;  %v1636_v35 = vsub.s32 %v224_v29, %v226_v30 }
  0x3a   :  { %v1361_v14 = vld [vmem:[#allocation5 + $0x20] sm:$0xff]   ;;  %v1365_v18 = vld [vmem:[#allocation5 + $0x18] sm:$0xff]   ;;  %v1368_v21 = vld [vmem:[#allocation5 + $0xd0] sm:$0xff]  }
  0x3b   :  { %1193 = vmatpush3.bf16.msra.mxu0 %v1353_v6  ;;  %v1362_v15 = vld [vmem:[#allocation5 + $0xa0] sm:$0xff]   ;;  %v1366_v19 = vld [vmem:[#allocation5 + $0x98] sm:$0xff]   ;;  %v1369_v25 = vld [vmem:[#allocation5 + $0x10] sm:$0xff]  }
  0x3c   :  { %1215 = vmatpush3.bf16.msra.mxu1 %v1354_v7  ;;  %1194 = vmatprep.subr.bf16.mxu0 %v1355_v8  ;;  %v1370_v26 = vld [vmem:[#allocation5 + $0x90] sm:$0xff]   ;;  %v1371_v27 = vld [vmem:[#allocation5 + $0x48] sm:$0xff]   ;;  %v1375_v33 = vld [vmem:[#allocation5 + $0x40] sm:$0xff]  }
  0x3d   :  { %1216 = vmatprep.subr.bf16.mxu1 %v1356_v9  ;;  %v1372_v28 = vld [vmem:[#allocation5 + $0xc8] sm:$0xff]   ;;  %v1376_v34 = vld [vmem:[#allocation5 + $0xc0] sm:$0xff]   ;;  %v84_v38 = vld [vmem:[#allocation2] sm:$0xff] }
  0x3e   :  { %v1373_v31 = vld [vmem:[#allocation5 + $0x8] sm:$0xff]   ;;  %v1377_v36 = vld [vmem:[#allocation5] sm:$0xff]   ;;  %v221_v39 = vcombine.high %v84_v38, %v84_v38  ;;  %v228_v40 = vrot.slane %v84_v38, %v1636_v35  ;;  %v1380_v41 = vld [vmem:[#allocation5 + $0x178] sm:$0xff]  }
  0x3f   :  { %1195 = vmatpush3.bf16.msra.mxu0 %v1357_v10  ;;  %v1374_v32 = vld [vmem:[#allocation5 + $0x88] sm:$0xff]   ;;  %v1378_v37 = vld [vmem:[#allocation5 + $0x80] sm:$0xff]   ;;  %v1381_v42 = vld [vmem:[#allocation5 + $0x1f8] sm:$0xff]  }
  0x40   :  { %1217 = vmatpush3.bf16.msra.mxu1 %v1358_v11  ;;  %1196 = vmatprep.subr.bf16.mxu0 %v1359_v12  ;;  %v236_v43 = vcombine.high %v228_v40, %v228_v40  ;;  %v244_v44 = vrot.slane %v228_v40, %v1636_v35  ;;  %v1641_v45 = vrot.slane %v221_v39, %v1636_v35  ;;  %v1382_v46 = vld [vmem:[#allocation5 + $0x138] sm:$0xff]   ;;  %v1384_v51 = vld [vmem:[#allocation5 + $0x170] sm:$0xff]   ;;  %v1388_v58 = vld [vmem:[#allocation5 + $0x168] sm:$0xff]  }
  0x41   :  { %1218 = vmatprep.subr.bf16.mxu1 %v1360_v13  ;;  %v1383_v48 = vld [vmem:[#allocation5 + $0x1b8] sm:$0xff]   ;;  %v1385_v53 = vld [vmem:[#allocation5 + $0x1f0] sm:$0xff]   ;;  %v1389_v59 = vld [vmem:[#allocation5 + $0x1e8] sm:$0xff]  }
  0x42   :  { %v258_v47 = vrot.slane %v236_v43, %v1636_v35  ;;  %v237_v49 = vcombine.high %v1641_v45, %v1641_v45  ;;  %v266_v50 = vcombine.high %v244_v44, %v244_v44  ;;  %v1386_v55 = vld [vmem:[#allocation5 + $0x130] sm:$0xff]   ;;  %v1390_v60 = vld [vmem:[#allocation5 + $0x128] sm:$0xff]   ;;  %v1392_v62 = vld [vmem:[#allocation5 + $0x160] sm:$0xff]  }
  0x43   :  { %1197 = vmatpush3.bf16.msra.mxu0 %v1361_v14  ;;  %v1387_v56 = vld [vmem:[#allocation5 + $0x1b0] sm:$0xff]   ;;  %v1391_v61 = vld [vmem:[#allocation5 + $0x1a8] sm:$0xff]   ;;  %v1393_v63 = vld [vmem:[#allocation5 + $0x1e0] sm:$0xff]  }
  0x44   :  { %1219 = vmatpush3.bf16.msra.mxu1 %v1362_v15  ;;  %1198 = vmatprep.subr.bf16.mxu0 %v1363_v16  ;;  %v268_v52 = vcombine.high %v258_v47, %v258_v47  ;;  %v265_v54 = vrot.slane %v237_v49, %v1636_v35  ;;  %v1394_v0 = vld [vmem:[#allocation5 + $0x120] sm:$0xff]   ;;  %v1396_v2 = vld [vmem:[#allocation5 + $0x158] sm:$0xff]   ;;  %v1400_v6 = vld [vmem:[#allocation5 + $0x150] sm:$0xff]  }
  0x45   :  { %1220 = vmatprep.subr.bf16.mxu1 %v1364_v17  ;;  %694 = vmatprep.mubr.bf16.mxu0 %v258_v47  ;;  %v1395_v1 = vld [vmem:[#allocation5 + $0x1a0] sm:$0xff]   ;;  %v1397_v3 = vld [vmem:[#allocation5 + $0x1d8] sm:$0xff]   ;;  %v1401_v7 = vld [vmem:[#allocation5 + $0x1d0] sm:$0xff]  }
  0x46   :  { %734 = vmatprep.mubr.bf16.mxu1 %v268_v52  ;;  %v269_v57 = vcombine.high %v265_v54, %v265_v54  ;;  %v1398_v4 = vld [vmem:[#allocation5 + $0x118] sm:$0xff]   ;;  %v1402_v8 = vld [vmem:[#allocation5 + $0x110] sm:$0xff]   ;;  %v1404_v10 = vld [vmem:[#allocation5 + $0x148] sm:$0xff]  }
  0x47   :  { %1199 = vmatpush3.bf16.msra.mxu0 %v1365_v18  ;;  %v1399_v5 = vld [vmem:[#allocation5 + $0x198] sm:$0xff]   ;;  %v1403_v9 = vld [vmem:[#allocation5 + $0x190] sm:$0xff]   ;;  %v1405_v11 = vld [vmem:[#allocation5 + $0x1c8] sm:$0xff]   ;;  %v251_v18 = vrot.slane %v1641_v45, %v1636_v35 }
  0x48   :  { %1221 = vmatpush3.bf16.msra.mxu1 %v1366_v19  ;;  %1200 = vmatprep.subr.bf16.mxu0 %v1367_v20  ;;  %v1406_v12 = vld [vmem:[#allocation5 + $0x108] sm:$0xff]   ;;  %v1408_v14 = vld [vmem:[#allocation5 + $0x140] sm:$0xff]   ;;  %v1412_v20 = vld [vmem:[#allocation7 + $0x38] sm:$0xff]  }
  0x49   :  { %1222 = vmatprep.subr.bf16.mxu1 %v1368_v21  ;;  %v1407_v13 = vld [vmem:[#allocation5 + $0x188] sm:$0xff]   ;;  %v1409_v15 = vld [vmem:[#allocation5 + $0x1c0] sm:$0xff]   ;;  %v267_v19 = vcombine.high %v251_v18, %v251_v18  ;;  %v1565_v21 = vmov 0.0   ;;  %v1413_v22 = vld [vmem:[#allocation7 + $0x30] sm:$0xff]  }
  0x4a   :  { %v1410_v16 = vld [vmem:[#allocation5 + $0x100] sm:$0xff]   ;;  %v1414_v23 = vld [vmem:[#allocation7 + $0x28] sm:$0xff]   ;;  %v1420_v30 = vld [vmem:[#allocation8 + $0x38] sm:$0xff]  }
  0x4b   :  { %1201 = vmatpush3.bf16.msra.mxu0 %v1369_v25  ;;  %v1411_v17 = vld [vmem:[#allocation5 + $0x180] sm:$0xff]   ;;  %v1425_v35 = vld [vmem:[#allocation8 + $0x10] sm:$0xff]   ;;  %v1107_v45 = vld [vmem:[%s1685_s2] ss:$0 sm:$0xff] }
  0x4c   :  { %1223 = vmatpush3.bf16.msra.mxu1 %v1370_v26  ;;  %1202 = vmatprep.subr.bf16.mxu0 %v1371_v27  ;;  %v1415_v25 = vld [vmem:[#allocation7 + $0x20] sm:$0xff]   ;;  %v1416_v26 = vld [vmem:[#allocation7 + $0x18] sm:$0xff]   ;;  %v1417_v27 = vld [vmem:[#allocation7 + $0x10] sm:$0xff]  }
  0x4d   :  { %1224 = vmatprep.subr.bf16.mxu1 %v1372_v28  ;;  %v1418_v28 = vld [vmem:[#allocation7 + $0x8] sm:$0xff]   ;;  %v1419_v29 = vld [vmem:[#allocation7] sm:$0xff]  }
  0x4f   :  { %1203 = vmatpush3.bf16.msra.mxu0 %v1373_v31  ;;  %v1421_v31 = vld [vmem:[#allocation8 + $0x30] sm:$0xff]  }
  0x50   :  { %1225 = vmatpush3.bf16.msra.mxu1 %v1374_v32  ;;  %1204 = vmatprep.subr.bf16.mxu0 %v1375_v33  ;;  %v1422_v32 = vld [vmem:[#allocation8 + $0x28] sm:$0xff]   ;;  %v1423_v33 = vld [vmem:[#allocation8 + $0x20] sm:$0xff]  }
  0x51   :  { %1226 = vmatprep.subr.bf16.mxu1 %v1376_v34  ;;  %v1424_v34 = vld [vmem:[#allocation8 + $0x18] sm:$0xff]  }
  0x53   :  { %1205 = vmatpush3.bf16.msra.mxu0 %v1377_v36 }
  0x54   :  { %1227 = vmatpush3.bf16.msra.mxu1 %v1378_v37  ;;  %1234 = vmatprep.subr.bf16.mxu0 %v1380_v41 }
  0x55   :  { %1256 = vmatprep.subr.bf16.mxu1 %v1381_v42 }
  0x56   :  { %695 = vmatmul.mubr.bf16.vlgmr.msra.gmra.mxu0 %v244_v44 }
  0x57   :  { %1235 = vmatpush3.bf16.msra.mxu0 %v1382_v46  ;;  %735 = vmatmul.mubr.bf16.vlgmr.msra.gmra.mxu1 %v266_v50 }
  0x58   :  { %1236 = vmatprep.subr.bf16.mxu0 %v1384_v51  ;;  %1257 = vmatpush3.bf16.msra.mxu1 %v1383_v48 }
  0x59   :  { %774 = vmatprep.mubr.bf16.mxu0 %v265_v54  ;;  %1258 = vmatprep.subr.bf16.mxu1 %v1385_v53 }
  0x5a   :  { %814 = vmatprep.mubr.bf16.mxu1 %v269_v57 }
  0x5b   :  { %1237 = vmatpush3.bf16.msra.mxu0 %v1386_v55 }
  0x5c   :  { %1238 = vmatprep.subr.bf16.mxu0 %v1388_v58  ;;  %1259 = vmatpush3.bf16.msra.mxu1 %v1387_v56 }
  0x5d   :  { %1260 = vmatprep.subr.bf16.mxu1 %v1389_v59 }
  0x5f   :  { %1239 = vmatpush3.bf16.msra.mxu0 %v1390_v60 }
  0x60   :  { %1240 = vmatprep.subr.bf16.mxu0 %v1392_v62  ;;  %1261 = vmatpush3.bf16.msra.mxu1 %v1391_v61 }
  0x61   :  { %1262 = vmatprep.subr.bf16.mxu1 %v1393_v63  ;;  %v1426_v63 = vld [vmem:[#allocation8 + $0x8] sm:$0xff]  }
  0x63   :  { %1241 = vmatpush3.bf16.msra.mxu0 %v1394_v0  ;;  %v1427_v0 = vld [vmem:[#allocation8] sm:$0xff]  }
  0x64   :  { %1242 = vmatprep.subr.bf16.mxu0 %v1396_v2  ;;  %1263 = vmatpush3.bf16.msra.mxu1 %v1395_v1  ;;  %v1172_v1 = vld [vmem:[%s1687_s4] ss:$0 sm:$0xff]  ;;  %s1567_s4 = smov [#allocation10]  }
  0x65   :  { %1264 = vmatprep.subr.bf16.mxu1 %v1397_v3 }
  0x67   :  { %1243 = vmatpush3.bf16.msra.mxu0 %v1398_v4 }
  0x68   :  { %1244 = vmatprep.subr.bf16.mxu0 %v1400_v6  ;;  %1265 = vmatpush3.bf16.msra.mxu1 %v1399_v5 }
  0x69   :  { %1266 = vmatprep.subr.bf16.mxu1 %v1401_v7 }
  0x6b   :  { %1245 = vmatpush3.bf16.msra.mxu0 %v1402_v8 }
  0x6c   :  { %1246 = vmatprep.subr.bf16.mxu0 %v1404_v10  ;;  %1267 = vmatpush3.bf16.msra.mxu1 %v1403_v9  ;;  %v1050_v9 = vand.u32 127, %v225_v24  ;;  %v1181_v10 = vld [vmem:[%s1689_s6] ss:$0 sm:$0xff]  ;;  %s1082_s6 = sshll.u32 %s1567_s4, 4  ;;  %s1083_s6 = int_to_ptr.vmem [resolvable:$true] %s1082_s6 }
  0x6d   :  { %1268 = vmatprep.subr.bf16.mxu1 %v1405_v11  ;;  %s1508_s28 = scalar_lea.vmem %s1083_s6, 32  ;;  %p1513_p7 = scmp.lt.s32.totalorder %s1083_s6, %s1083_s6 }
  0x6e   :  { %vm1051_vm1 = vcmp.lt.s32.totalorder %v1050_v9, 8  ;;  %p1509_p6 = scmp.ne.s32.totalorder %s1083_s6, %s1508_s28  ;;  %p1514_p8 = scmp.lt.s32.totalorder %s1508_s28, %s1508_s28 }
  0x6f   :  { %1247 = vmatpush3.bf16.msra.mxu0 %v1406_v12 }
  0x70   :  { %1248 = vmatprep.subr.bf16.mxu0 %v1408_v14  ;;  %1269 = vmatpush3.bf16.msra.mxu1 %v1407_v13  ;;  %p1515_p9 = por %p1514_p8, %p1513_p7 }
  0x71   :  { %1270 = vmatprep.subr.bf16.mxu1 %v1409_v15 }
  0x72   :  { %p1516_p10 = pnand %p1515_p9, %p1509_p6 }
  0x73   :  { %1249 = vmatpush3.bf16.msra.mxu0 %v1410_v16 }
  0x74   :  { %1271 = vmatpush3.bf16.msra.mxu1 %v1411_v17  ;;  %1296 = vmatprep.subr.bf16.mxu0 %v1565_v21 }
  0x75   :  { %1316 = vmatprep.subr.bf16.mxu1 %v1565_v21 }
  0x76   :  { %775 = vmatmul.mubr.bf16.vlgmr.msra.gmra.mxu0 %v251_v18 }
  0x77   :  { %815 = vmatmul.mubr.bf16.vlgmr.msra.gmra.mxu1 %v267_v19  ;;  %1297 = vmatpush3.bf16.msra.mxu0 %v1412_v20 }
  0x78   :  { %1298 = vmatprep.subr.bf16.mxu0 %v1565_v21  ;;  %1312 = vmatprep.mubr.msk.bf16.mxu0 %vm1566_vm0, %v1565_v21 }
  0x79   :  { %1332 = vmatprep.mubr.msk.bf16.mxu1 %vm1566_vm0, %v1565_v21  ;;  %1317 = vmatpush3.bf16.msra.mxu1 %v1420_v30 }
  0x7a   :  { %1318 = vmatprep.subr.bf16.mxu1 %v1565_v21 }
  0x7b   :  { %1299 = vmatpush3.bf16.msra.mxu0 %v1413_v22 }
  0x7c   :  { %1300 = vmatprep.subr.bf16.mxu0 %v1565_v21 }
  0x7d   :  { %1319 = vmatpush3.bf16.msra.mxu1 %v1421_v31 }
  0x7e   :  { %1320 = vmatprep.subr.bf16.mxu1 %v1565_v21 }
  0x7f   :  { %1301 = vmatpush3.bf16.msra.mxu0 %v1414_v23 }
  0x80   :  { %1302 = vmatprep.subr.bf16.mxu0 %v1565_v21 }
  0x81   :  { %1321 = vmatpush3.bf16.msra.mxu1 %v1422_v32 }
  0x82   :  { %1322 = vmatprep.subr.bf16.mxu1 %v1565_v21 }
  0x83   :  { %1303 = vmatpush3.bf16.msra.mxu0 %v1415_v25 }
  0x84   :  { %1304 = vmatprep.subr.bf16.mxu0 %v1565_v21 }
  0x85   :  { %1323 = vmatpush3.bf16.msra.mxu1 %v1423_v33 }
  0x86   :  { %1324 = vmatprep.subr.bf16.mxu1 %v1565_v21 }
  0x87   :  { %1305 = vmatpush3.bf16.msra.mxu0 %v1416_v26 }
  0x88   :  { %1306 = vmatprep.subr.bf16.mxu0 %v1565_v21 }
  0x89   :  { %1325 = vmatpush3.bf16.msra.mxu1 %v1424_v34 }
  0x8a   :  { %1326 = vmatprep.subr.bf16.mxu1 %v1565_v21 }
  0x8b   :  { %1307 = vmatpush3.bf16.msra.mxu0 %v1417_v27 }
  0x8c   :  { %1308 = vmatprep.subr.bf16.mxu0 %v1565_v21 }
  0x8d   :  { %1327 = vmatpush3.bf16.msra.mxu1 %v1425_v35 }
  0x8e   :  { %1328 = vmatprep.subr.bf16.mxu1 %v1565_v21 }
  0x8f   :  { %1309 = vmatpush3.bf16.msra.mxu0 %v1418_v28 }
  0x90   :  { %1310 = vmatprep.subr.bf16.mxu0 %v1565_v21 }
  0x91   :  { %1329 = vmatpush3.bf16.msra.mxu1 %v1426_v63 }
  0x92   :  { %1330 = vmatprep.subr.bf16.mxu1 %v1565_v21 }
  0x93   :  { %1311 = vmatpush3.bf16.msra.mxu0 %v1419_v29 }
  0x95   :  { %1331 = vmatpush3.bf16.msra.mxu1 %v1427_v0 }
 0x116   :  { %v1206_v36 = vpop.f32.mrf.mxu0 }
 0x117   :  { %v1228_v37 = vpop.f32.mrf.mxu1 }
 0x118   :  { %v1207_v38 = vpop.f32.mrf.mxu0 }
 0x119   :  { %v1229_v39 = vpop.f32.mrf.mxu1  ;;  %v1208_v44 = vadd.f32 %v1207_v38, %v1206_v36 }
 0x11a   :  { %v1209_v40 = vpop.f32.mrf.mxu0  ;;  %v1230_v47 = vadd.f32 %v1229_v39, %v1228_v37 }
 0x11b   :  { %v1231_v41 = vpop.f32.mrf.mxu1  ;;  %v697_v46 = vadd.f32 %v1208_v44, %v1107_v45 }
 0x11c   :  { %v1210_v42 = vpop.f32.mrf.mxu0 }
 0x11d   :  { %v1232_v43 = vpop.f32.mrf.mxu1  ;;  %v737_v51 = vadd.f32 %v1230_v47, %v697_v46 }
 0x136   :  { %v1250_v48 = vpop.f32.mrf.mxu0 }
 0x137   :  { %v1272_v49 = vpop.f32.mrf.mxu1 }
 0x138   :  { %v1251_v50 = vpop.f32.mrf.mxu0 }
 0x139   :  { %v1252_v52 = vadd.f32 %v1251_v50, %v1250_v48  ;;  %v1273_v53 = vpop.f32.mrf.mxu1 }
 0x13a   :  { %v1253_v54 = vpop.f32.mrf.mxu0  ;;  %v1274_v56 = vadd.f32 %v1273_v53, %v1272_v49 }
 0x13b   :  { %v777_v55 = vadd.f32 %v1252_v52, %v737_v51  ;;  %v1275_v57 = vpop.f32.mrf.mxu1 }
 0x13c   :  { %v1254_v58 = vpop.f32.mrf.mxu0 }
 0x13d   :  { %v817_v59 = vadd.f32 %v1274_v56, %v777_v55  ;;  %v1276_v60 = vpop.f32.mrf.mxu1 }
 0x13f   :  { %v822_v61 = vmax.f32 %v817_v59, 0.0 }
 0x141   :  { %v823_v62 = vpack.c.bf16 %v822_v61, %v822_v61 }
 0x143   :  { %1313 = vmatmul.mubr.bf16.vlgmr.msra.gmra.mxu0 %v823_v62 }
 0x203   :  { %v929_v2 = vpop.f32.mrf.mxu0 }
 0x204   :  { %v930_v3 = vadd.f32 %v1172_v1, %v929_v2 }
 0x205   :  { %v1314_v4 = vpop.f32.mrf.mxu0 }
 0x206   :  { %v935_v5 = vmax.f32 %v930_v3, 0.0 }
 0x207   :  { %v932_v6 = vpop.f32.mrf.mxu0 }
 0x208   :  { %v936_v7 = vpack.c.bf16 %v935_v5, %v935_v5 }
 0x209   :  { %v1315_v8 = vpop.f32.mrf.mxu0 }
 0x20a   :  { %1333 = vmatmul.mubr.bf16.vlgmr.msra.gmra.mxu1 %v936_v7 }
 0x2ca   :  { %v1042_v11 = vpop.f32.mrf.mxu1 }
 0x2cb   :  { %v1043_v12 = vadd.f32 %v1181_v10, %v1042_v11 }
 0x2cc   :  { %v1334_v13 = vpop.f32.mrf.mxu1 }
 0x2cd   :  { %1048 = vst [vmem:[#allocation10] sm:$0x3] %v1043_v12  ;;  %v1052_v14 = vsel %vm1051_vm1, %v1043_v12, -1e+30 }
 0x2ce   :  { %v1045_v15 = vpop.f32.mrf.mxu1  ;;  %v1054_v16 = vsel %vm1053_vm2, %v1052_v14, -inf }
 0x2cf   :  { %1055 = vmax.xlane.f32.xlu0 %v1054_v16 }
 0x2d0   :  { %v1335_v17 = vpop.f32.mrf.mxu1 }
 0x358   :  { %v1056_v18 = vpop.xlane.xlu0 %1055 }
 0x359   :  { %vm1057_vm3 = vcmp.eq.f32.partialorder %v1052_v14, %v1056_v18 }
 0x35a   :  { %vm1058_vm4 = vmand %vm1057_vm3, %vm1051_vm1 }
 0x35b   :  { %v1059_v19 = vsel %vm1058_vm4, %v1050_v9, 128 }
 0x35c   :  { %v1060_v24 = vsel %vm1053_vm2, %v1059_v19, 2147483647 }
 0x35d   :  { %v1062_v20 = vshra.s32 %v1060_v24, 16  ;;  %v1061_v22 = vand.u32 65535, %v1060_v24 }
 0x35f   :  { %v1064_v21 = vcvt.s32.f32 %v1062_v20  ;;  %v1063_v25 = vcvt.s32.f32 %v1061_v22 }
 0x361   :  { %1065 = vmin.xlane.f32.xlu0 %v1064_v21 }
 0x3ea   :  { %v1066_v23 = vpop.xlane.xlu0 %1065 }
 0x3eb   :  { %vm1067_vm5 = vcmp.eq.f32.partialorder %v1064_v21, %v1066_v23 }
 0x3ec   :  { %v1068_v26 = vsel %vm1067_vm5, %v1063_v25, inf }
 0x3ed   :  { %1069 = vmin.xlane.f32.xlu1 %v1068_v26 }
 0x3ee   :  { %1519 = shalt.err (!%p1516_p10)
}
 0x3ef   :  { %1085 = dma.vmem_to_hbm [thread:$0]  %s1083_s6, 32, %s1690_s7, [#allocation4]   ;;  %v1072_v27 = vcvt.f32.s32 %v1066_v23 }
 0x3f0   :  { %s1568_s9 = smov [#allocation11]  }
 0x3f1   :  { %s1092_s10 = sshll.u32 %s1568_s9, 4  ;;  %v1073_v29 = vshll.u32 %v1072_v27, 16  ;;  %s1093_s10 = int_to_ptr.vmem [resolvable:$true] %s1092_s10 }
 0x3f2   :  { %s1528_s11 = scalar_lea.vmem %s1093_s10, 32  ;;  %p1533_p12 = scmp.lt.s32.totalorder %s1093_s10, %s1093_s10 }
 0x3f3   :  { %p1529_p11 = scmp.ne.s32.totalorder %s1093_s10, %s1528_s11  ;;  %p1534_p13 = scmp.lt.s32.totalorder %s1528_s11, %s1528_s11 }
 0x3f5   :  { %p1535_p0 = por %p1534_p13, %p1533_p12 }
 0x3f7   :  { %p1536_p1 = pnand %p1535_p0, %p1529_p11 }
 0x476   :  { %v1070_v28 = vpop.xlane.xlu1 %1069 }
 0x477   :  { %v1071_v30 = vcvt.f32.s32 %v1070_v28 }
 0x479   :  { %v1074_v31 = vadd.s32 %v1073_v29, %v1071_v30 }
 0x47b   :  { %1075 = vst [vmem:[#allocation11] sm:$0x3] %v1074_v31 }
 0x47c   :  { %1539 = shalt.err (!%p1536_p1)
}
 0x47d   :  { %1095 = dma.vmem_to_hbm [thread:$0]  %s1093_s10, 32, %s1691_s8, [#allocation12]  }
 0x47e   :  { %1554 = dma.done.wait [#allocation4], 32  }
 0x47f   :  { %1555 = vsyncadd [#allocation4], 4294967264 }
 0x480   :  { %1556 = dma.done.wait [#allocation12], 32  }
 0x481   :  { %1557 = vsyncadd [#allocation12], 4294967264 }
 0x482   :  { %1102 = vsyncpa [#allocation3], 1 }
 0x483   :  { %1103 = vsyncpa [#allocation6], 1 }
 0x484   :  { %1104 = vsyncpa [#allocation9], 1 }
 0x485   :  { %1105 = vsyncpa [#allocation4], 1 }
 0x486   :  { %1106 = vsyncpa [#allocation12], 1 }

</bundles_post_ra>
